<compile_context>
chip_gen: v7x
topology: tpu7x:2x2x1
jax: 0.10.0
libtpu: 0.0.40
codegen_flags: <defaults>
</compile_context>

<pallas_src>
import jax
import jax.numpy as jnp
from jax.experimental import pallas as pl
from jax.experimental.pallas import tpu as pltpu


def _hmod_neg_kernel(pos_ref, diam_ref, w1_ref, b1_ref, w2n_ref, b2n_ref,
                     out_ref):
    pos = pos_ref[...]                                   # [tm, 2] f32
    # hidden = ReLU([pos | diam] @ W1 + b1).  The K=3 contraction is done as
    # three VPU rank-1 (broadcast-multiply) updates instead of an MXU matmul:
    # a K=2/3 matmul wastes a full MXU weight push for 2-3 contraction rows,
    # while these multiplies issue in the vector-ALU slot alongside the real
    # H->2 MXU matmul below.  The concat([pos, diam]) is fused here.
    h = (pos[:, 0:1] * w1_ref[0:1, :]
         + pos[:, 1:2] * w1_ref[1:2, :]
         + diam_ref[...] * w1_ref[2:3, :]
         + b1_ref[...])
    h = jnp.maximum(h, 0.0)
    # dvel = -tanh(h @ W2 + b2) == tanh(h @ (-W2) + (-b2)); the negation is
    # folded into w2n/b2n at init.  Output width is the true 2 lanes (no
    # 128-lane padding): the masked vst on a [tm, 2] tile is not a bottleneck.
    y = jnp.dot(h, w2n_ref[...], preferred_element_type=jnp.float32) + b2n_ref[...]
    out_ref[...] = jnp.tanh(y)


def hmod_neg(pos, diam, w1, b1, w2_neg, b2_neg, *, tile_m=256):
    """-tanh(relu([pos|diam] @ W1 + b1) @ W2 + b2), tiled over rows.

    pos:    [N, 2] f32
    diam:   [N, 1] f32
    w1:     [3, H] f32
    b1:     [1, H] f32
    w2_neg: [H, 2] f32   (-W2, negation folded at init)
    b2_neg: [1, 2] f32   (-b2)
    returns [N, 2] f32

    N is arbitrary: to amortize launch + weight-DMA cost over many ODE
    evaluations, stack RK stages / time steps / trajectories into N.  Weights
    use a constant block index so they stay VMEM-resident across the grid, and
    the row grid is "parallel" so >=2 tiles shard across both v7x TensorCores.
    """
    n = pos.shape[0]
    d_hid = w1.shape[1]
    d_out = w2_neg.shape[1]

    # Row tile: multiple of 8 sublanes, capped at tile_m.  For the batched
    # (large-N) regime sweep tile_m in {128, 256, 512}: 128 keeps the hidden
    # activation within the vreg file, 512 halves per-grid-step overhead.
    tm = min(tile_m, max(8, -(-n // 8) * 8))
    n_pad = -(-n // tm) * tm
    if n_pad != n:               # skip pad copies when N is a tile multiple
        pos = jnp.pad(pos, ((0, n_pad - n), (0, 0)))
        diam = jnp.pad(diam, ((0, n_pad - n), (0, 0)))

    cost = pl.CostEstimate(
        flops=2 * n_pad * (3 * d_hid + d_hid * d_out),
        transcendentals=n_pad * d_out,
        bytes_accessed=4 * (n_pad * (3 + d_out)
                            + 3 * d_hid + d_hid + d_hid * d_out + d_out),
    )

    out = pl.pallas_call(
        _hmod_neg_kernel,
        out_shape=jax.ShapeDtypeStruct((n_pad, d_out), jnp.float32),
        grid=(n_pad // tm,),
        in_specs=[
            pl.BlockSpec((tm, 2), lambda i: (i, 0)),         # pos tile
            pl.BlockSpec((tm, 1), lambda i: (i, 0)),         # diameter tile
            pl.BlockSpec((3, d_hid), lambda i: (0, 0)),      # W1  (VMEM-resident)
            pl.BlockSpec((1, d_hid), lambda i: (0, 0)),      # b1  (VMEM-resident)
            pl.BlockSpec((d_hid, d_out), lambda i: (0, 0)),  # -W2 (VMEM-resident)
            pl.BlockSpec((1, d_out), lambda i: (0, 0)),      # -b2 (VMEM-resident)
        ],
        out_specs=pl.BlockSpec((tm, d_out), lambda i: (i, 0)),
        compiler_params=pltpu.CompilerParams(
            dimension_semantics=("parallel",)),
        cost_estimate=cost,
    )(pos, diam, w1, b1, w2_neg, b2_neg)

    if n_pad != n:               # padded rows are garbage-in; slice them off
        out = out[:n]
    return out


class HamiltonianDynamicsPallas:
    """JAX/Pallas port of HamiltonianDynamics (forward pass only)."""
    # TODO(synk): dvel_init / get_dvel are stateful convenience methods of the
    # original module and are not part of forward(); not implemented here.

    D_OUT = 2

    def __init__(self, n_all_ob, key, hidden_dim=512):
        self.n_all_ob = n_all_ob
        in_dim, out_dim = 2 + 1, self.D_OUT
        k1, k2, k3, k4 = jax.random.split(key, 4)
        # Deterministic init mimicking nn.Linear's uniform(-1/sqrt(fan_in), ...).
        b_in = 1.0 / jnp.sqrt(jnp.float32(in_dim))
        b_hid = 1.0 / jnp.sqrt(jnp.float32(hidden_dim))
        # Reference-layout weights ([D_in, D_out], i.e. transposed vs nn.Linear).
        self.w1 = jax.random.uniform(k1, (in_dim, hidden_dim), jnp.float32, -b_in, b_in)
        self.b1 = jax.random.uniform(k2, (1, hidden_dim), jnp.float32, -b_in, b_in)
        self.w2 = jax.random.uniform(k3, (hidden_dim, out_dim), jnp.float32, -b_hid, b_hid)
        self.b2 = jax.random.uniform(k4, (1, out_dim), jnp.float32, -b_hid, b_hid)
        # Kernel-layout params (one-time, init-only transform): pre-negate
        # W2/b2 so the output negate is folded into the weights.  No padding.
        self.w2_neg = -self.w2           # [H, 2]
        self.b2_neg = -self.b2           # [1, 2]

    def __call__(self, t, state):
        pos, vel, num, diameter, *rest = state
        dpos = vel
        # Both branches of the original forward (num-dependent Python control
        # flow) reduce to the same per-row MLP over concat([pos[i], diam[i]]);
        # the concat is fused in-kernel via the rank-1 diameter update.
        dvel = hmod_neg(
            pos.astype(jnp.float32),
            diameter.astype(jnp.float32)[:, None],
            self.w1, self.b1, self.w2_neg, self.b2_neg,
        )
        zeros_num = jnp.zeros((num.shape[0],), jnp.float32)
        zeros_diam = jnp.zeros_like(diameter)
        zeros_rest = tuple(jnp.zeros_like(r) for r in rest)
        return (dpos, dvel, zeros_num, zeros_diam, *zeros_rest)


def _reference_forward(model, t, state):
    """Pure-JAX reference (original concatenated-x formulation)."""
    pos, vel, num, diameter, *rest = state
    x = jnp.concatenate([pos, diameter[:, None]], axis=1).astype(jnp.float32)
    h = jnp.maximum(x @ model.w1 + model.b1, 0.0)
    dvel = -jnp.tanh(h @ model.w2 + model.b2)
    return (vel, dvel, jnp.zeros((num.shape[0],), jnp.float32),
            jnp.zeros_like(diameter), *[jnp.zeros_like(r) for r in rest])


if __name__ == "__main__":
    key = jax.random.PRNGKey(0)
    k_model, k_pos, k_vel, k_diam, k_rest, k_big = jax.random.split(key, 6)

    n_all_ob = 8
    model = HamiltonianDynamicsPallas(n_all_ob, k_model)

    pos = jax.random.normal(k_pos, (n_all_ob, 2), jnp.float32)
    vel = jax.random.normal(k_vel, (n_all_ob, 2), jnp.float32)
    num = jnp.full((n_all_ob,), 1.0, jnp.float32)
    diameter = jax.random.uniform(k_diam, (n_all_ob,), jnp.float32, 0.5, 1.5)
    rest = (jax.random.normal(k_rest, (n_all_ob, 3), jnp.float32),)

    t = jnp.float32(0.0)
    state = (pos, vel, num, diameter, *rest)

    # Single-evaluation forward (matches the original module semantics).
    out = jax.block_until_ready(model(t, state))
    ref = _reference_forward(model, t, state)
    for o, r in zip(out, ref):
        assert o.shape == r.shape and o.dtype == r.dtype
        assert jnp.allclose(o, r, atol=1e-5, rtol=1e-5)

    # Amortized / batched path: stack many ODE evaluations (RK stages, time
    # steps, trajectories) into the row dimension of ONE call so launch +
    # weight DMA is paid once.  Small tile here to also exercise grid > 1 and
    # the ragged-tail padding path.
    n_big = 5 * n_all_ob                       # e.g. 5 stacked RK stages
    pos_b = jax.random.normal(k_big, (n_big, 2), jnp.float32)
    diam_b = jnp.tile(diameter, 5)[:, None]
    dvel_b = jax.block_until_ready(
        hmod_neg(pos_b, diam_b, model.w1, model.b1, model.w2_neg, model.b2_neg,
                 tile_m=16))
    x_b = jnp.concatenate([pos_b, diam_b], axis=1)
    h_b = jnp.maximum(x_b @ model.w1 + model.b1, 0.0)
    ref_b = -jnp.tanh(h_b @ model.w2 + model.b2)
    assert dvel_b.shape == ref_b.shape
    assert jnp.allclose(dvel_b, ref_b, atol=1e-5, rtol=1e-5)

    print("KERNEL_OK")
</pallas_src>

<mosaic_0001>
module attributes {stable_mosaic.version = 11 : i64} {
  func.func @_hmod_neg_kernel(%arg0: i32, %arg1: memref<8x2xf32, #tpu.memory_space<vmem>>, %arg2: memref<8x1xf32, #tpu.memory_space<vmem>>, %arg3: memref<3x512xf32, #tpu.memory_space<vmem>>, %arg4: memref<1x512xf32, #tpu.memory_space<vmem>>, %arg5: memref<512x2xf32, #tpu.memory_space<vmem>>, %arg6: memref<1x2xf32, #tpu.memory_space<vmem>>, %arg7: memref<8x2xf32, #tpu.memory_space<vmem>>) attributes {dimension_semantics = [#tpu.dimension_semantics<parallel>], iteration_bounds = array<i64: 1>, scalar_prefetch = 0 : i64, scratch_operands = 0 : i64, tpu.core_type = #tpu.core_type<tc>, window_params = [{transform_indices = @transform_0, window_bounds = array<i64: 8, 2>}, {transform_indices = @transform_1, window_bounds = array<i64: 8, 1>}, {pipeline_mode = #tpu.pipeline_mode<synchronous>, transform_indices = @transform_2, window_bounds = array<i64: 3, 512>}, {pipeline_mode = #tpu.pipeline_mode<synchronous>, transform_indices = @transform_3, window_bounds = array<i64: 1, 512>}, {pipeline_mode = #tpu.pipeline_mode<synchronous>, transform_indices = @transform_4, window_bounds = array<i64: 512, 2>}, {pipeline_mode = #tpu.pipeline_mode<synchronous>, transform_indices = @transform_5, window_bounds = array<i64: 1, 2>}, {transform_indices = @transform_6, window_bounds = array<i64: 8, 2>}]} {
    %c0 = arith.constant 0 : index
    %c0_0 = arith.constant 0 : index
    %0 = vector.load %arg1[%c0, %c0_0] : memref<8x2xf32, #tpu.memory_space<vmem>>, vector<8x2xf32>
    %1 = vector.extract_strided_slice %0 {offsets = [0, 0], sizes = [8, 1], strides = [1, 1]} : vector<8x2xf32> to vector<8x1xf32>
    %c0_1 = arith.constant 0 : index
    %c0_2 = arith.constant 0 : index
    %2 = vector.load %arg3[%c0_1, %c0_2] : memref<3x512xf32, #tpu.memory_space<vmem>>, vector<1x512xf32>
    %3 = vector.broadcast %1 : vector<8x1xf32> to vector<8x512xf32>
    %4 = vector.broadcast %2 : vector<1x512xf32> to vector<8x512xf32>
    %5 = arith.mulf %3, %4 : vector<8x512xf32>
    %6 = vector.extract_strided_slice %0 {offsets = [0, 1], sizes = [8, 1], strides = [1, 1]} : vector<8x2xf32> to vector<8x1xf32>
    %c1 = arith.constant 1 : index
    %c0_3 = arith.constant 0 : index
    %7 = vector.load %arg3[%c1, %c0_3] : memref<3x512xf32, #tpu.memory_space<vmem>>, vector<1x512xf32>
    %8 = vector.broadcast %6 : vector<8x1xf32> to vector<8x512xf32>
    %9 = vector.broadcast %7 : vector<1x512xf32> to vector<8x512xf32>
    %10 = arith.mulf %8, %9 : vector<8x512xf32>
    %11 = arith.addf %5, %10 : vector<8x512xf32>
    %c0_4 = arith.constant 0 : index
    %c0_5 = arith.constant 0 : index
    %12 = vector.load %arg2[%c0_4, %c0_5] : memref<8x1xf32, #tpu.memory_space<vmem>>, vector<8x1xf32>
    %c2 = arith.constant 2 : index
    %c0_6 = arith.constant 0 : index
    %13 = vector.load %arg3[%c2, %c0_6] : memref<3x512xf32, #tpu.memory_space<vmem>>, vector<1x512xf32>
    %14 = vector.broadcast %12 : vector<8x1xf32> to vector<8x512xf32>
    %15 = vector.broadcast %13 : vector<1x512xf32> to vector<8x512xf32>
    %16 = arith.mulf %14, %15 : vector<8x512xf32>
    %17 = arith.addf %11, %16 : vector<8x512xf32>
    %c0_7 = arith.constant 0 : index
    %c0_8 = arith.constant 0 : index
    %18 = vector.load %arg4[%c0_7, %c0_8] : memref<1x512xf32, #tpu.memory_space<vmem>>, vector<1x512xf32>
    %19 = vector.broadcast %18 : vector<1x512xf32> to vector<8x512xf32>
    %20 = arith.addf %17, %19 : vector<8x512xf32>
    %cst = arith.constant 0.000000e+00 : f32
    %21 = vector.broadcast %cst : f32 to vector<8x512xf32>
    %22 = arith.maximumf %20, %21 : vector<8x512xf32>
    %c0_9 = arith.constant 0 : index
    %c0_10 = arith.constant 0 : index
    %23 = vector.load %arg5[%c0_9, %c0_10] : memref<512x2xf32, #tpu.memory_space<vmem>>, vector<512x2xf32>
    %cst_11 = arith.constant dense<0.000000e+00> : vector<8x2xf32>
    %24 = tpu.matmul %22, %23, %cst_11 {dimension_numbers = #tpu.dot_dimension_numbers<[1], [0], [0], [1], [0, 0, 1, 1], [], []>} : vector<8x512xf32>, vector<512x2xf32>, vector<8x2xf32> -> vector<8x2xf32>
    %c0_12 = arith.constant 0 : index
    %c0_13 = arith.constant 0 : index
    %25 = vector.load %arg6[%c0_12, %c0_13] : memref<1x2xf32, #tpu.memory_space<vmem>>, vector<1x2xf32>
    %26 = vector.broadcast %25 : vector<1x2xf32> to vector<8x2xf32>
    %27 = arith.addf %24, %26 : vector<8x2xf32>
    %28 = math.tanh %27 : vector<8x2xf32>
    %c0_14 = arith.constant 0 : index
    %c0_15 = arith.constant 0 : index
    %29 = vector.load %arg7[%c0_14, %c0_15] : memref<8x2xf32, #tpu.memory_space<vmem>>, vector<8x2xf32>
    tpu.vector_store %arg7[%c0_14, %c0_15], %28 {strides = array<i32>} : memref<8x2xf32, #tpu.memory_space<vmem>>, vector<8x2xf32>,
    return
  }
  func.func @transform_0(%arg0: i32) -> (i32, i32) {
    %c0_i32 = arith.constant 0 : i32
    %c0_i32_0 = arith.constant 0 : i32
    return %arg0, %c0_i32 : i32, i32
  }
  func.func @transform_1(%arg0: i32) -> (i32, i32) {
    %c0_i32 = arith.constant 0 : i32
    %c0_i32_0 = arith.constant 0 : i32
    return %arg0, %c0_i32 : i32, i32
  }
  func.func @transform_2(%arg0: i32) -> (i32, i32) {
    %c0_i32 = arith.constant 0 : i32
    %c0_i32_0 = arith.constant 0 : i32
    %c0_i32_1 = arith.constant 0 : i32
    return %c0_i32, %c0_i32_0 : i32, i32
  }
  func.func @transform_3(%arg0: i32) -> (i32, i32) {
    %c0_i32 = arith.constant 0 : i32
    %c0_i32_0 = arith.constant 0 : i32
    %c0_i32_1 = arith.constant 0 : i32
    return %c0_i32, %c0_i32_0 : i32, i32
  }
  func.func @transform_4(%arg0: i32) -> (i32, i32) {
    %c0_i32 = arith.constant 0 : i32
    %c0_i32_0 = arith.constant 0 : i32
    %c0_i32_1 = arith.constant 0 : i32
    return %c0_i32, %c0_i32_0 : i32, i32
  }
  func.func @transform_5(%arg0: i32) -> (i32, i32) {
    %c0_i32 = arith.constant 0 : i32
    %c0_i32_0 = arith.constant 0 : i32
    %c0_i32_1 = arith.constant 0 : i32
    return %c0_i32, %c0_i32_0 : i32, i32
  }
  func.func @transform_6(%arg0: i32) -> (i32, i32) {
    %c0_i32 = arith.constant 0 : i32
    %c0_i32_0 = arith.constant 0 : i32
    return %arg0, %c0_i32 : i32, i32
  }
}

</mosaic_0001>

<bundles_post_ra>
// kernel: tpu_custom_call.1
= control target key start
LH: loop header
LB: loop body
LE: loop exit
PB: predicated region body
PF: predicated region fallthrough
CT: control target
= control target key end

     0   :  { %v520_v0 = vmov 0   ;;  %v521_v21 = vmov 1   ;;  %vm369_vm0 = vcmask 15360   ;;  %s776_s0 = inlined_call_operand.vmem [shape: f32[8,2], index: 0, kind: input, shape index: {}]   ;;  %s777_s1 = inlined_call_operand.vmem [shape: f32[8,1], index: 1, kind: input, shape index: {}]   ;;  %s778_s4 = inlined_call_operand.vmem [shape: f32[512,2], index: 4, kind: input, shape index: {}]   ;;  %s779_s2 = inlined_call_operand.vmem [shape: f32[3,512], index: 2, kind: input, shape index: {}]   ;;  %s780_s3 = inlined_call_operand.vmem [shape: f32[1,512], index: 3, kind: input, shape index: {}]   ;;  %s781_s5 = inlined_call_operand.vmem [shape: f32[1,2], index: 5, kind: input, shape index: {}]   ;;  %s782_s6 = inlined_call_operand.vmem [shape: f32[8,2], index: 6, kind: output, shape index: {}]  }
   0x1   :  { %514 = vset.pattern.permute.xlu0 %v520_v0  ;;  %v23_v1 = vld [vmem:[%s776_s0] sm:$0xff]  ;;  %516 = vset.pattern.permute.xlu1 %v520_v0  ;;  %v174_v4 = vld [vmem:[%s778_s4 + $0x88] sm:$0xff]  ;;  %v175_v14 = vld [vmem:[%s778_s4 + $0x90] sm:$0xff] }
   0x2   :  { %v90_v2 = vld [vmem:[%s777_s1] sm:$0xff]  ;;  %27 = vperm.xlu0 %514, %v23_v1   ;;  %v206_v6 = vld [vmem:[%s778_s4 + $0x188] sm:$0xff]  ;;  %v176_v15 = vld [vmem:[%s778_s4 + $0x98] sm:$0xff] }
   0x3   :  { %v173_v3 = vld [vmem:[%s778_s4 + $0x80] sm:$0xff]  ;;  %95 = vperm.xlu1 %516, %v90_v2   ;;  %v158_v10 = vld [vmem:[%s778_s4 + $0x8] sm:$0xff]  ;;  %v452_v17 = vpack.c.bf16 %v176_v15, %v175_v14  ;;  %v207_v18 = vld [vmem:[%s778_s4 + $0x190] sm:$0xff] }
   0x4   :  { %v205_v5 = vld [vmem:[%s778_s4 + $0x180] sm:$0xff]  ;;  %v448_v7 = vpack.c.bf16 %v174_v4, %v173_v3  ;;  %v190_v13 = vld [vmem:[%s778_s4 + $0x108] sm:$0xff]  ;;  %v208_v19 = vld [vmem:[%s778_s4 + $0x198] sm:$0xff] }
   0x5   :  { %v480_v8 = vpack.c.bf16 %v206_v6, %v205_v5  ;;  %v157_v9 = vld [vmem:[%s778_s4] sm:$0xff]  ;;  %v159_v20 = vld [vmem:[%s778_s4 + $0x10] sm:$0xff]  ;;  %v484_v22 = vpack.c.bf16 %v208_v19, %v207_v18  ;;  %v160_v23 = vld [vmem:[%s778_s4 + $0x18] sm:$0xff] }
   0x6   :  { %v189_v11 = vld [vmem:[%s778_s4 + $0x100] sm:$0xff]  ;;  %v450_v12 = vpack.c.bf16 %v158_v10, %v157_v9  ;;  %449 = vmatprep.subr.bf16.mxu0 %v448_v7  ;;  %515 = vset.pattern.permute.xlu0 %v521_v21  ;;  %v191_v24 = vld [vmem:[%s778_s4 + $0x110] sm:$0xff]  ;;  %v192_v25 = vld [vmem:[%s778_s4 + $0x118] sm:$0xff]  ;;  %v454_v26 = vpack.c.bf16 %v160_v23, %v159_v20 }
   0x7   :  { %481 = vmatprep.subr.bf16.mxu1 %v480_v8  ;;  %v482_v16 = vpack.c.bf16 %v190_v13, %v189_v11  ;;  %58 = vperm.xlu0 %515, %v23_v1   ;;  %v486_v27 = vpack.c.bf16 %v192_v25, %v191_v24  ;;  %v177_v28 = vld [vmem:[%s778_s4 + $0xa0] sm:$0xff]  ;;  %v178_v29 = vld [vmem:[%s778_s4 + $0xa8] sm:$0xff]  ;;  %v179_v38 = vld [vmem:[%s778_s4 + $0xb0] sm:$0xff] }
   0x8   :  { %451 = vmatpush3.bf16.msra.mxu0 %v450_v12  ;;  %v209_v30 = vld [vmem:[%s778_s4 + $0x1a0] sm:$0xff]  ;;  %v456_v31 = vpack.c.bf16 %v178_v29, %v177_v28  ;;  %v210_v32 = vld [vmem:[%s778_s4 + $0x1a8] sm:$0xff]  ;;  %v180_v40 = vld [vmem:[%s778_s4 + $0xb8] sm:$0xff] }
   0x9   :  { %483 = vmatpush3.bf16.msra.mxu1 %v482_v16  ;;  %453 = vmatprep.subr.bf16.mxu0 %v452_v17  ;;  %v161_v33 = vld [vmem:[%s778_s4 + $0x20] sm:$0xff]  ;;  %v162_v34 = vld [vmem:[%s778_s4 + $0x28] sm:$0xff]  ;;  %v488_v35 = vpack.c.bf16 %v210_v32, %v209_v30  ;;  %v211_v41 = vld [vmem:[%s778_s4 + $0x1b0] sm:$0xff]  ;;  %v460_v44 = vpack.c.bf16 %v180_v40, %v179_v38 }
   0xa   :  { %485 = vmatprep.subr.bf16.mxu1 %v484_v22  ;;  %v193_v36 = vld [vmem:[%s778_s4 + $0x120] sm:$0xff]  ;;  %v194_v37 = vld [vmem:[%s778_s4 + $0x128] sm:$0xff]  ;;  %v458_v39 = vpack.c.bf16 %v162_v34, %v161_v33  ;;  %v212_v42 = vld [vmem:[%s778_s4 + $0x1b8] sm:$0xff] }
   0xb   :  { %v490_v43 = vpack.c.bf16 %v194_v37, %v193_v36  ;;  %v163_v45 = vld [vmem:[%s778_s4 + $0x30] sm:$0xff]  ;;  %v164_v46 = vld [vmem:[%s778_s4 + $0x38] sm:$0xff]  ;;  %v492_v47 = vpack.c.bf16 %v212_v42, %v211_v41  ;;  %v181_v50 = vld [vmem:[%s778_s4 + $0xc0] sm:$0xff]  ;;  %517 = vset.pattern.permute.xlu0 %v520_v0  ;;  %v31_v36 = vlaneseq }
   0xc   :  { %455 = vmatpush3.bf16.msra.mxu0 %v454_v26  ;;  %v195_v48 = vld [vmem:[%s778_s4 + $0x130] sm:$0xff]  ;;  %v196_v49 = vld [vmem:[%s778_s4 + $0x138] sm:$0xff]  ;;  %v182_v51 = vld [vmem:[%s778_s4 + $0xc8] sm:$0xff]  ;;  %v462_v54 = vpack.c.bf16 %v164_v46, %v163_v45 }
   0xd   :  { %487 = vmatpush3.bf16.msra.mxu1 %v486_v27  ;;  %457 = vmatprep.subr.bf16.mxu0 %v456_v31  ;;  %v213_v52 = vld [vmem:[%s778_s4 + $0x1c0] sm:$0xff]  ;;  %v214_v53 = vld [vmem:[%s778_s4 + $0x1c8] sm:$0xff]  ;;  %v494_v55 = vpack.c.bf16 %v196_v49, %v195_v48  ;;  %v464_v56 = vpack.c.bf16 %v182_v51, %v181_v50  ;;  %v183_v62 = vld [vmem:[%s778_s4 + $0xd0] sm:$0xff]  ;;  %v32_v37 = vshrl.u32 %v31_v36, 7 }
   0xe   :  { %489 = vmatprep.subr.bf16.mxu1 %v488_v35  ;;  %v165_v57 = vld [vmem:[%s778_s4 + $0x40] sm:$0xff]  ;;  %v166_v58 = vld [vmem:[%s778_s4 + $0x48] sm:$0xff]  ;;  %v496_v60 = vpack.c.bf16 %v214_v53, %v213_v52  ;;  %v184_v63 = vld [vmem:[%s778_s4 + $0xd8] sm:$0xff] }
   0xf   :  { %v197_v59 = vld [vmem:[%s778_s4 + $0x140] sm:$0xff]  ;;  %v198_v61 = vld [vmem:[%s778_s4 + $0x148] sm:$0xff]  ;;  %v215_v0 = vld [vmem:[%s778_s4 + $0x1d0] sm:$0xff]  ;;  %v466_v2 = vpack.c.bf16 %v166_v58, %v165_v57  ;;  %v468_v4 = vpack.c.bf16 %v184_v63, %v183_v62  ;;  %v33_v38 = vsub.s32 0, %v32_v37  ;;  %v41_v40 = vsub.s32 2, %v32_v37 }
  0x10   :  { %459 = vmatpush3.bf16.msra.mxu0 %v458_v39  ;;  %v216_v1 = vld [vmem:[%s778_s4 + $0x1d8] sm:$0xff]  ;;  %v498_v3 = vpack.c.bf16 %v198_v61, %v197_v59  ;;  %v167_v5 = vld [vmem:[%s778_s4 + $0x50] sm:$0xff]  ;;  %v185_v10 = vld [vmem:[%s778_s4 + $0xe0] sm:$0xff]  ;;  %v37_v39 = vsub.s32 1, %v32_v37  ;;  %v45_v41 = vsub.s32 3, %v32_v37 }
  0x11   :  { %491 = vmatpush3.bf16.msra.mxu1 %v490_v43  ;;  %461 = vmatprep.subr.bf16.mxu0 %v460_v44  ;;  %v168_v6 = vld [vmem:[%s778_s4 + $0x58] sm:$0xff]  ;;  %v199_v7 = vld [vmem:[%s778_s4 + $0x150] sm:$0xff]  ;;  %v500_v8 = vpack.c.bf16 %v216_v1, %v215_v0  ;;  %v186_v11 = vld [vmem:[%s778_s4 + $0xe8] sm:$0xff] }
  0x12   :  { %493 = vmatprep.subr.bf16.mxu1 %v492_v47  ;;  %v200_v9 = vld [vmem:[%s778_s4 + $0x158] sm:$0xff]  ;;  %v217_v12 = vld [vmem:[%s778_s4 + $0x1e0] sm:$0xff]  ;;  %v218_v13 = vld [vmem:[%s778_s4 + $0x1e8] sm:$0xff]  ;;  %v470_v14 = vpack.c.bf16 %v168_v6, %v167_v5  ;;  %v472_v16 = vpack.c.bf16 %v186_v11, %v185_v10 }
  0x13   :  { %v502_v15 = vpack.c.bf16 %v200_v9, %v199_v7  ;;  %v169_v17 = vld [vmem:[%s778_s4 + $0x60] sm:$0xff]  ;;  %v170_v18 = vld [vmem:[%s778_s4 + $0x68] sm:$0xff]  ;;  %v504_v20 = vpack.c.bf16 %v218_v13, %v217_v12  ;;  %v187_v22 = vld [vmem:[%s778_s4 + $0xf0] sm:$0xff] }
  0x14   :  { %463 = vmatpush3.bf16.msra.mxu0 %v462_v54  ;;  %v201_v19 = vld [vmem:[%s778_s4 + $0x160] sm:$0xff]  ;;  %v202_v21 = vld [vmem:[%s778_s4 + $0x168] sm:$0xff]  ;;  %v188_v23 = vld [vmem:[%s778_s4 + $0xf8] sm:$0xff]  ;;  %v474_v26 = vpack.c.bf16 %v170_v18, %v169_v17 }
  0x15   :  { %495 = vmatpush3.bf16.msra.mxu1 %v494_v55  ;;  %465 = vmatprep.subr.bf16.mxu0 %v464_v56  ;;  %v219_v24 = vld [vmem:[%s778_s4 + $0x1f0] sm:$0xff]  ;;  %v220_v25 = vld [vmem:[%s778_s4 + $0x1f8] sm:$0xff]  ;;  %v506_v27 = vpack.c.bf16 %v202_v21, %v201_v19  ;;  %v476_v28 = vpack.c.bf16 %v188_v23, %v187_v22  ;;  %v24_v42 = vld [vmem:[%s779_s2] ss:$4 sm:$0xf] }
  0x16   :  { %497 = vmatprep.subr.bf16.mxu1 %v496_v60  ;;  %v171_v29 = vld [vmem:[%s778_s4 + $0x70] sm:$0xff]  ;;  %v172_v30 = vld [vmem:[%s778_s4 + $0x78] sm:$0xff]  ;;  %v508_v31 = vpack.c.bf16 %v220_v25, %v219_v24  ;;  %v376_v43 = vld [vmem:[%s779_s2 + $0x2] ss:$4 sm:$0xf]  ;;  %v34_v45 = vrot.slane %v24_v42, %v33_v38  ;;  %v38_v46 = vrot.slane %v24_v42, %v37_v39  ;;  %v42_v47 = vrot.slane %v24_v42, %v41_v40 }
  0x17   :  { %v203_v32 = vld [vmem:[%s778_s4 + $0x170] sm:$0xff]  ;;  %v204_v33 = vld [vmem:[%s778_s4 + $0x178] sm:$0xff]  ;;  %v478_v34 = vpack.c.bf16 %v172_v30, %v171_v29  ;;  %v375_v44 = vld [vmem:[%s779_s2 + $0x1] ss:$4 sm:$0xf]  ;;  %v46_v48 = vrot.slane %v24_v42, %v45_v41  ;;  %v102_v50 = vrot.slane %v376_v43, %v33_v38  ;;  %v106_v51 = vrot.slane %v376_v43, %v37_v39 }
  0x18   :  { %467 = vmatpush3.bf16.msra.mxu0 %v466_v2  ;;  %v510_v35 = vpack.c.bf16 %v204_v33, %v203_v32  ;;  %v110_v52 = vrot.slane %v376_v43, %v41_v40  ;;  %v114_v53 = vrot.slane %v376_v43, %v45_v41  ;;  %v65_v54 = vrot.slane %v375_v44, %v33_v38  ;;  %v127_v63 = vld [vmem:[%s780_s3] sm:$0xf] }
  0x19   :  { %499 = vmatpush3.bf16.msra.mxu1 %v498_v3  ;;  %469 = vmatprep.subr.bf16.mxu0 %v468_v4  ;;  %v69_v55 = vrot.slane %v375_v44, %v37_v39  ;;  %v73_v56 = vrot.slane %v375_v44, %v41_v40  ;;  %v77_v57 = vrot.slane %v375_v44, %v45_v41 }
  0x1a   :  { %501 = vmatprep.subr.bf16.mxu1 %v500_v8  ;;  %v136_v9 = vrot.slane %v127_v63, %v37_v39  ;;  %v144_v10 = vrot.slane %v127_v63, %v45_v41  ;;  %v132_v11 = vrot.slane %v127_v63, %v33_v38  ;;  %v140_v12 = vrot.slane %v127_v63, %v41_v40 }
  0x1c   :  { %471 = vmatpush3.bf16.msra.mxu0 %v470_v14 }
  0x1d   :  { %503 = vmatpush3.bf16.msra.mxu1 %v502_v15  ;;  %473 = vmatprep.subr.bf16.mxu0 %v472_v16 }
  0x1e   :  { %505 = vmatprep.subr.bf16.mxu1 %v504_v20 }
  0x20   :  { %475 = vmatpush3.bf16.msra.mxu0 %v474_v26 }
  0x21   :  { %507 = vmatpush3.bf16.msra.mxu1 %v506_v27  ;;  %477 = vmatprep.subr.bf16.mxu0 %v476_v28 }
  0x22   :  { %509 = vmatprep.subr.bf16.mxu1 %v508_v31  ;;  %v377_v31 = vld [vmem:[%s781_s5] ss:$0 sm:$0xff] }
  0x24   :  { %479 = vmatpush3.bf16.msra.mxu0 %v478_v34 }
  0x25   :  { %511 = vmatpush3.bf16.msra.mxu1 %v510_v35 }
  0x81   :  { %v28_v49 = vpop.permute.xlu0 %27 }
  0x82   :  { %v96_v58 = vpop.permute.xlu1 %95  ;;  %v51_v59 = vmul.f32 %v34_v45, %v28_v49  ;;  %v52_v60 = vmul.f32 %v38_v46, %v28_v49  ;;  %v53_v61 = vmul.f32 %v42_v47, %v28_v49  ;;  %v54_v62 = vmul.f32 %v46_v48, %v28_v49 }
  0x83   :  { %v119_v1 = vmul.f32 %v102_v50, %v96_v58  ;;  %v120_v2 = vmul.f32 %v106_v51, %v96_v58  ;;  %v121_v3 = vmul.f32 %v110_v52, %v96_v58  ;;  %v122_v4 = vmul.f32 %v114_v53, %v96_v58 }
  0x86   :  { %v59_v0 = vpop.permute.xlu0 %58 }
  0x87   :  { %v82_v5 = vmul.f32 %v65_v54, %v59_v0  ;;  %v83_v6 = vmul.f32 %v69_v55, %v59_v0  ;;  %v84_v7 = vmul.f32 %v73_v56, %v59_v0  ;;  %v85_v8 = vmul.f32 %v77_v57, %v59_v0 }
  0x89   :  { %v86_v13 = vadd.f32 %v82_v5, %v51_v59  ;;  %v88_v14 = vadd.f32 %v84_v7, %v53_v61  ;;  %v87_v15 = vadd.f32 %v83_v6, %v52_v60  ;;  %v89_v16 = vadd.f32 %v85_v8, %v54_v62 }
  0x8b   :  { %v123_v17 = vadd.f32 %v119_v1, %v86_v13  ;;  %v125_v18 = vadd.f32 %v121_v3, %v88_v14  ;;  %v124_v19 = vadd.f32 %v120_v2, %v87_v15  ;;  %v126_v20 = vadd.f32 %v122_v4, %v89_v16 }
  0x8d   :  { %v150_v21 = vadd.f32 %v136_v9, %v124_v19  ;;  %v152_v22 = vadd.f32 %v144_v10, %v126_v20  ;;  %v149_v23 = vadd.f32 %v132_v11, %v123_v17  ;;  %v151_v24 = vadd.f32 %v140_v12, %v125_v18 }
  0x8f   :  { %v154_v25 = vmax.f32 %v150_v21, 0.0  ;;  %v156_v26 = vmax.f32 %v152_v22, 0.0  ;;  %v153_v27 = vmax.f32 %v149_v23, 0.0  ;;  %v155_v28 = vmax.f32 %v151_v24, 0.0 }
  0x91   :  { %292 = vmatprep.mubr.f32.mxu0 %v154_v25  ;;  %362 = vmatprep.mubr.f32.mxu1 %v156_v26 }
  0x92   :  { %293 = vmatmul.mubr.f32.vlgmr.msra.gmra.mrb[0].mxu0 %v153_v27  ;;  %363 = vmatmul.mubr.f32.vlgmr.msra.gmra.mrb[0].mxu1 %v155_v28 }
 0x165   :  { %v410_v29 = vpop.f32.mrb[0].mxu0  ;;  %v445_v30 = vpop.f32.mrb[0].mxu1 }
 0x166   :  { %v411_v32 = vpop.f32.mrb[1].mxu0  ;;  %v446_v33 = vpop.f32.mrb[1].mxu1 }
 0x167   :  { %v412_v34 = vadd.f32 %v411_v32, %v410_v29  ;;  %v447_v35 = vadd.f32 %v446_v33, %v445_v30 }
 0x169   :  { %v295_v36 = vadd.f32 %v412_v34, %v377_v31 }
 0x16b   :  { %v365_v37 = vadd.f32 %v447_v35, %v295_v36 }
 0x16d   :  { %518 = vtanh.f32 %v365_v37 }
 0x177   :  { %v519_v38 = vpop.eup %518 }
 0x178   :  { %370 = vst.msk [vmem:[%s782_s6] sm:$0xff] %vm369_vm0, %v519_v38 }

</bundles_post_ra>
